<compile_context>
chip_gen: v7x
topology: tpu7x:2x2x1
jax: 0.10.0
libtpu: 0.0.40
codegen_flags: <defaults>
</compile_context>

<pallas_src>
import jax
import jax.numpy as jnp
from jax import lax
from jax.experimental import pallas as pl
from jax.experimental.pallas import tpu as pltpu


def _round_up(x, m):
    return ((x + m - 1) // m) * m


def _plan(dim, cap, multiple):
    """Pick (tile, padded_dim) for one dimension.

    If the dim fits in a single tile we use a full-extent block (no alignment
    requirement, no padding copy). Otherwise tile = cap rounded down to the
    layout multiple and the dim is padded up to a multiple of the tile.
    """
    if dim <= cap:
        return dim, dim
    tile = max(multiple, (cap // multiple) * multiple)
    return tile, _round_up(dim, tile)


def _linear_kernel_single_k(x_ref, w_ref, b_ref, o_ref):
    # Whole K in one tile: dot + bias straight to the output block.
    acc = lax.dot_general(
        x_ref[...], w_ref[...],
        dimension_numbers=(((1,), (1,)), ((), ())),   # x @ w.T on the MXU
        preferred_element_type=jnp.float32,
    )
    o_ref[...] = (acc + b_ref[...].astype(jnp.float32)).astype(o_ref.dtype)


def _linear_kernel_multi_k(x_ref, w_ref, b_ref, o_ref, acc_ref):
    # x_ref: (tm, tk), w_ref: (tn, tk), b_ref: (1, tn), o_ref: (tm, tn)
    k = pl.program_id(2)

    @pl.when(k == 0)
    def _():
        # Seed the accumulator with the broadcast bias -> no epilogue add.
        acc_ref[...] = jnp.broadcast_to(
            b_ref[...].astype(jnp.float32), acc_ref.shape)

    acc_ref[...] += lax.dot_general(
        x_ref[...], w_ref[...],
        dimension_numbers=(((1,), (1,)), ((), ())),
        preferred_element_type=jnp.float32,
    )

    @pl.when(k == pl.num_programs(2) - 1)
    def _():
        o_ref[...] = acc_ref[...].astype(o_ref.dtype)


def adaptor_forward(x, weight, bias, *, compute_dtype=None,
                    tm_cap=512, tn_cap=512, tk_cap=None):
    """x: (B, input_dim); weight: (output_dim, input_dim); bias: (output_dim,)."""
    B, D_in = x.shape
    D_out, D_in_w = weight.shape
    assert D_in == D_in_w and bias.shape == (D_out,)
    out_dtype = x.dtype

    cdt = jnp.dtype(compute_dtype) if compute_dtype is not None else jnp.dtype(x.dtype)
    itemsize = cdt.itemsize
    if tk_cap is None:
        tk_cap = 2048 if itemsize <= 2 else 1024
    # Sublane multiple for a tiled M dim: 8 (f32) / 16 (bf16) / 32 (int8/fp8).
    sub = max(8, 32 // itemsize)

    tm, M_pad = _plan(B, tm_cap, sub)
    tn, N_pad = _plan(D_out, tn_cap, 128)
    tk, K_pad = _plan(D_in, tk_cap, 128)

    x_c = x.astype(cdt)
    w_c = weight.astype(cdt)
    # Pad only when a dim is actually tiled; zero rows/cols are inert for the
    # matmul and sliced off at the end.
    if (M_pad, K_pad) != (B, D_in):
        x_c = jnp.pad(x_c, ((0, M_pad - B), (0, K_pad - D_in)))
    if (N_pad, K_pad) != (D_out, D_in):
        w_c = jnp.pad(w_c, ((0, N_pad - D_out), (0, K_pad - D_in)))
    b_c = bias.astype(jnp.float32)
    if N_pad != D_out:
        b_c = jnp.pad(b_c, (0, N_pad - D_out))
    b_c = b_c.reshape(1, N_pad)

    grid = (M_pad // tm, N_pad // tn, K_pad // tk)
    multi_k = grid[2] > 1

    kernel = _linear_kernel_multi_k if multi_k else _linear_kernel_single_k
    scratch = [pltpu.VMEM((tm, tn), jnp.float32)] if multi_k else []

    bytes_accessed = (
        x_c.size * itemsize
        + w_c.size * itemsize
        + b_c.size * 4
        + M_pad * N_pad * jnp.dtype(out_dtype).itemsize
    )

    out = pl.pallas_call(
        kernel,
        out_shape=jax.ShapeDtypeStruct((M_pad, N_pad), out_dtype),
        grid_spec=pltpu.PrefetchScalarGridSpec(
            num_scalar_prefetch=0,
            grid=grid,
            in_specs=[
                pl.BlockSpec((tm, tk), lambda i, j, k: (i, k)),   # x tile
                pl.BlockSpec((tn, tk), lambda i, j, k: (j, k)),   # W tile (D_out, D_in)
                pl.BlockSpec((1, tn), lambda i, j, k: (0, j)),    # bias tile (K-invariant)
            ],
            out_specs=pl.BlockSpec((tm, tn), lambda i, j, k: (i, j)),
            scratch_shapes=scratch,
        ),
        compiler_params=pltpu.CompilerParams(
            # M/N parallel (megacore on v7x), reduction axis K last & arbitrary.
            dimension_semantics=("parallel", "parallel", "arbitrary"),
            # Fits v5e/v6e (128 MiB physical) and stays under v7x's 64 MiB.
            vmem_limit_bytes=48 * 1024 * 1024,
        ),
        cost_estimate=pl.CostEstimate(
            flops=2 * M_pad * N_pad * K_pad,
            transcendentals=0,
            bytes_accessed=bytes_accessed,
        ),
    )(x_c, w_c, b_c)

    if (M_pad, N_pad) != (B, D_out):
        out = out[:B, :D_out]
    return out


if __name__ == "__main__":
    key = jax.random.PRNGKey(0)

    # 1) Small shapes consistent with the module: batch=8, input_dim=32,
    #    output_dim=16. Single block, no padding, single-K fast path.
    B, D_in, D_out = 8, 32, 16
    kx, kw, kb, k2 = jax.random.split(key, 4)
    x = jax.random.normal(kx, (B, D_in), dtype=jnp.float32)
    bound = 1.0 / jnp.sqrt(jnp.float32(D_in))
    weight = jax.random.uniform(kw, (D_out, D_in), minval=-bound, maxval=bound,
                                dtype=jnp.float32)
    bias = jax.random.uniform(kb, (D_out,), minval=-bound, maxval=bound,
                              dtype=jnp.float32)

    y = jax.block_until_ready(adaptor_forward(x, weight, bias))
    y_ref = x @ weight.T + bias
    assert y.shape == (B, D_out)
    assert jnp.allclose(y, y_ref, atol=1e-5, rtol=1e-5)

    # 2) Larger shape with small tile caps to exercise the K-tiled accumulation
    #    path (bias-seeded accumulator, pl.when finalize, K padding).
    B2, D_in2, D_out2 = 16, 640, 384
    kx2, kw2, kb2 = jax.random.split(k2, 3)
    x2 = jax.random.normal(kx2, (B2, D_in2), dtype=jnp.float32)
    bound2 = 1.0 / jnp.sqrt(jnp.float32(D_in2))
    w2 = jax.random.uniform(kw2, (D_out2, D_in2), minval=-bound2, maxval=bound2,
                            dtype=jnp.float32)
    b2 = jax.random.uniform(kb2, (D_out2,), minval=-bound2, maxval=bound2,
                            dtype=jnp.float32)

    y2 = jax.block_until_ready(
        adaptor_forward(x2, w2, b2, tm_cap=128, tn_cap=128, tk_cap=256))
    y2_ref = x2 @ w2.T + b2
    assert y2.shape == (B2, D_out2)
    assert jnp.allclose(y2, y2_ref, atol=1e-4, rtol=1e-4)

    # 3) bf16 compute path (halves HBM bytes, native bf16 MXU); f32 accumulate,
    #    output returned in the input dtype.
    y3 = jax.block_until_ready(
        adaptor_forward(x, weight, bias, compute_dtype=jnp.bfloat16))
    assert y3.shape == (B, D_out) and y3.dtype == x.dtype
    assert jnp.allclose(y3, y_ref, atol=3e-2, rtol=3e-2)

    print("KERNEL_OK")
</pallas_src>

<mosaic_0001>
module attributes {stable_mosaic.version = 11 : i64} {
  func.func @_linear_kernel_single_k(%arg0: i32, %arg1: i32, %arg2: i32, %arg3: memref<8x32xf32, #tpu.memory_space<vmem>>, %arg4: memref<16x32xf32, #tpu.memory_space<vmem>>, %arg5: memref<1x16xf32, #tpu.memory_space<vmem>>, %arg6: memref<8x16xf32, #tpu.memory_space<vmem>>) attributes {dimension_semantics = [#tpu.dimension_semantics<parallel>, #tpu.dimension_semantics<parallel>, #tpu.dimension_semantics<arbitrary>], iteration_bounds = array<i64: 1, 1, 1>, scalar_prefetch = 0 : i64, scratch_operands = 0 : i64, tpu.core_type = #tpu.core_type<tc>, window_params = [{transform_indices = @transform_0, window_bounds = array<i64: 8, 32>}, {transform_indices = @transform_1, window_bounds = array<i64: 16, 32>}, {transform_indices = @transform_2, window_bounds = array<i64: 1, 16>}, {transform_indices = @transform_3, window_bounds = array<i64: 8, 16>}]} {
    %c0 = arith.constant 0 : index
    %c0_0 = arith.constant 0 : index
    %0 = vector.load %arg3[%c0, %c0_0] : memref<8x32xf32, #tpu.memory_space<vmem>>, vector<8x32xf32>
    %c0_1 = arith.constant 0 : index
    %c0_2 = arith.constant 0 : index
    %1 = vector.load %arg4[%c0_1, %c0_2] : memref<16x32xf32, #tpu.memory_space<vmem>>, vector<16x32xf32>
    %cst = arith.constant dense<0.000000e+00> : vector<8x16xf32>
    %2 = tpu.matmul %0, %1, %cst {dimension_numbers = #tpu.dot_dimension_numbers<[1], [1], [0], [0], [0, 0, 1, 0], [], []>} : vector<8x32xf32>, vector<16x32xf32>, vector<8x16xf32> -> vector<8x16xf32>
    %c0_3 = arith.constant 0 : index
    %c0_4 = arith.constant 0 : index
    %3 = vector.load %arg5[%c0_3, %c0_4] : memref<1x16xf32, #tpu.memory_space<vmem>>, vector<1x16xf32>
    %4 = vector.broadcast %3 : vector<1x16xf32> to vector<8x16xf32>
    %5 = arith.addf %2, %4 : vector<8x16xf32>
    %c0_5 = arith.constant 0 : index
    %c0_6 = arith.constant 0 : index
    %6 = vector.load %arg6[%c0_5, %c0_6] : memref<8x16xf32, #tpu.memory_space<vmem>>, vector<8x16xf32>
    tpu.vector_store %arg6[%c0_5, %c0_6], %5 {strides = array<i32>} : memref<8x16xf32, #tpu.memory_space<vmem>>, vector<8x16xf32>,
    return
  }
  func.func @transform_0(%arg0: i32, %arg1: i32, %arg2: i32) -> (i32, i32) {
    %c0_i32 = arith.constant 0 : i32
    return %arg0, %arg2 : i32, i32
  }
  func.func @transform_1(%arg0: i32, %arg1: i32, %arg2: i32) -> (i32, i32) {
    %c0_i32 = arith.constant 0 : i32
    return %arg1, %arg2 : i32, i32
  }
  func.func @transform_2(%arg0: i32, %arg1: i32, %arg2: i32) -> (i32, i32) {
    %c0_i32 = arith.constant 0 : i32
    %c0_i32_0 = arith.constant 0 : i32
    return %c0_i32, %arg1 : i32, i32
  }
  func.func @transform_3(%arg0: i32, %arg1: i32, %arg2: i32) -> (i32, i32) {
    %c0_i32 = arith.constant 0 : i32
    return %arg0, %arg1 : i32, i32
  }
}

</mosaic_0001>

<bundles_post_ra>
// kernel: tpu_custom_call.1
= control target key start
LH: loop header
LB: loop body
LE: loop exit
PB: predicated region body
PF: predicated region fallthrough
CT: control target
= control target key end

     0   :  { %8 = vsyncpa [#allocation3], 0  ;;  %s321_s0 = inlined_call_operand.hbm [shape: f32[8,32], index: 0, kind: input, shape index: {}]   ;;  %s322_s1 = inlined_call_operand.hbm [shape: f32[16,32], index: 1, kind: input, shape index: {}]   ;;  %s323_s2 = inlined_call_operand.vmem [shape: f32[1,16], index: 2, kind: input, shape index: {}]   ;;  %s324_s3 = inlined_call_operand.hbm [shape: f32[8,16], index: 3, kind: output, shape index: {}]  }
   0x1   :  { %9 = vsyncpa [#allocation6], 0 }
   0x2   :  { %10 = vsyncpa [#allocation4], 0  ;;  %s247_s12 = smov [#allocation2]   ;;  %s248_s14 = smov [#allocation5]  }
   0x3   :  { %s17_s13 = sshll.u32 %s247_s12, 4  ;;  %s26_s15 = sshll.u32 %s248_s14, 4  ;;  %s18_s13 = int_to_ptr.vmem [resolvable:$true] %s17_s13  ;;  %s275_s15 = int_to_ptr.vmem [resolvable:$true] %s26_s15 }
   0x4   :  { %s175_s18 = scalar_lea.hbm %s321_s0, 128 }
   0x5   :  { %p176_p0 = scmp.ne.s32.totalorder %s321_s0, %s175_s18  ;;  %p179_p1 = scmp.lt.u32.totalorder %s175_s18, %s321_s0 }
   0x7   :  { %p181_p2 = pnand %p179_p1, %p176_p0 }
   0x9   :  { %184 = shalt.err (!%p181_p2)
}
   0xa   :  { %s185_s23 = scalar_lea.vmem %s18_s13, 128  ;;  %p190_p4 = scmp.lt.s32.totalorder %s18_s13, %s18_s13 }
   0xb   :  { %p186_p3 = scmp.ne.s32.totalorder %s18_s13, %s185_s23  ;;  %p191_p5 = scmp.lt.s32.totalorder %s185_s23, %s185_s23 }
   0xd   :  { %p192_p6 = por %p191_p5, %p190_p4 }
   0xf   :  { %p193_p7 = pnand %p192_p6, %p186_p3 }
  0x11   :  { %196 = shalt.err (!%p193_p7)
}
  0x12   :  { %20 = dma.hbm_to_vmem [thread:$0]  %s321_s0, 128, %s18_s13, [#allocation3]  }
  0x13   :  { %s197_s28 = scalar_lea.hbm %s322_s1, 256 }
  0x14   :  { %p198_p8 = scmp.ne.s32.totalorder %s322_s1, %s197_s28  ;;  %p201_p9 = scmp.lt.u32.totalorder %s197_s28, %s322_s1 }
  0x16   :  { %p203_p10 = pnand %p201_p9, %p198_p8 }
  0x18   :  { %206 = shalt.err (!%p203_p10)
}
  0x19   :  { %s207_s6 = scalar_lea.vmem %s275_s15, 256  ;;  %p212_p12 = scmp.lt.s32.totalorder %s275_s15, %s275_s15 }
  0x1a   :  { %p208_p11 = scmp.ne.s32.totalorder %s275_s15, %s207_s6  ;;  %p213_p13 = scmp.lt.s32.totalorder %s207_s6, %s207_s6 }
  0x1c   :  { %p214_p0 = por %p213_p13, %p212_p12 }
  0x1e   :  { %p215_p1 = pnand %p214_p0, %p208_p11 }
  0x20   :  { %218 = shalt.err (!%p215_p1)
}
  0x21   :  { %s249_s0 = smov 128   ;;  %s250_s7 = smov 8  }
  0x22   :  { %32 = dma.hbm_to_vmem [thread:$0]  %s322_s1, 256, %s275_s15, [#allocation6], %s249_s0, %s249_s0, %s250_s7  }
  0x23   :  { %241 = dma.done.wait [#allocation3], 128  }
  0x24   :  { %242 = vsyncadd [#allocation3], 4294967168 }
  0x25   :  { %243 = dma.done.wait [#allocation6], 256  }
  0x26   :  { %244 = vsyncadd [#allocation6], 4294967040  ;;  %v251_v0 = vmov 0.0|0.0   ;;  %vm252_vm0 = vmmov 0   ;;  %v253_v1 = vmov 0.0   ;;  %vm51_vm1 = vcmask 261120  }
  0x27   :  { %163 = vmatprep.subr.bf16.mxu0 %v251_v0  ;;  %160 = vmatprep.mubr.msk.f32.mxu0 %vm252_vm0, %v253_v1  ;;  %v42_v2 = vld [vmem:[#allocation5] sm:$0xff]  ;;  %v43_v3 = vld [vmem:[#allocation5 + $0x8] sm:$0xff]  ;;  %vm165_vm2 = vmpackc.low %vm51_vm1, %vm51_vm1  ;;  %s254_s1 = smov [#allocation7]   ;;  %vm131_vm3 = vcmask 130048  }
  0x28   :  { %v164_v4 = vpack.c.bf16 %v43_v3, %v42_v2  ;;  %v41_v5 = vld [vmem:[#allocation2] sm:$0xff]  ;;  %s139_s12 = sshll.u32 %s254_s1, 4  ;;  %s140_s12 = int_to_ptr.vmem [resolvable:$true] %s139_s12 }
  0x29   :  { %v149_v6 = vld [vmem:[%s323_s2] ss:$0 sm:$0xff]  ;;  %s219_s13 = scalar_lea.vmem %s140_s12, 128  ;;  %p224_p3 = scmp.lt.s32.totalorder %s140_s12, %s140_s12 }
  0x2a   :  { %166 = vmatpush3.bf16.xpose.msk.msra.mxu0 %vm165_vm2, %v164_v4  ;;  %p220_p2 = scmp.ne.s32.totalorder %s140_s12, %s219_s13  ;;  %p225_p4 = scmp.lt.s32.totalorder %s219_s13, %s219_s13 }
  0x2c   :  { %p226_p5 = por %p225_p4, %p224_p3 }
  0x2e   :  { %p227_p6 = pnand %p226_p5, %p220_p2 }
  0x31   :  { %161 = vmatmul.mubr.msk.f32.vlgmr.msra.gmra.mrb[0].mxu0 %vm51_vm1, %v41_v5 }
 0x104   :  { %v127_v7 = vpop.f32.mrb[0].mxu0 }
 0x105   :  { %v128_v8 = vadd.f32 %v149_v6, %v127_v7  ;;  %v162_v9 = vpop.f32.mrb[1].mxu0 }
 0x107   :  { %132 = vst.msk [vmem:[#allocation7] sm:$0xff] %vm131_vm3, %v128_v8 }
 0x108   :  { %230 = shalt.err (!%p227_p6)
}
 0x109   :  { %s231_s16 = scalar_lea.hbm %s324_s3, 128 }
 0x10a   :  { %p232_p7 = scmp.ne.s32.totalorder %s324_s3, %s231_s16  ;;  %p235_p8 = scmp.lt.u32.totalorder %s231_s16, %s324_s3 }
 0x10c   :  { %p237_p9 = pnand %p235_p8, %p232_p7 }
 0x10e   :  { %240 = shalt.err (!%p237_p9)
}
 0x10f   :  { %142 = dma.vmem_to_hbm [thread:$0]  %s140_s12, 128, %s324_s3, [#allocation4]  }
 0x110   :  { %245 = dma.done.wait [#allocation4], 128  }
 0x111   :  { %246 = vsyncadd [#allocation4], 4294967168 }
 0x112   :  { %146 = vsyncpa [#allocation3], 1 }
 0x113   :  { %147 = vsyncpa [#allocation6], 1 }
 0x114   :  { %148 = vsyncpa [#allocation4], 1 }

</bundles_post_ra>
